<compile_context>
chip_gen: v7x
topology: tpu7x:2x2x1
jax: 0.10.0
libtpu: 0.0.40
codegen_flags: <defaults>
</compile_context>

<pallas_src>
import functools

import jax
import jax.numpy as jnp
from jax.experimental import pallas as pl
from jax.experimental.pallas import tpu as pltpu


def k2l_recovery_kernel(q_ref, resid_ref, x_ref, wk_ref, wv_ref, bk_ref, bv_ref,
                        wp_ref, o_ref, acc_ref, *, approx_recip):
    """One (batch-block, head) grid step of learned-token cross-attention."""
    h = pl.program_id(1)

    BB, S, C = x_ref.shape
    _, hd, N = q_ref.shape

    # First head: seed the accumulator with (x_token + proj bias), broadcast
    # over the batch block (pre-added in the wrapper).
    @pl.when(h == 0)
    def _():
        acc_ref[...] = jnp.broadcast_to(
            resid_ref[...][None].astype(jnp.float32), (BB, N, C))

    x3 = x_ref[...]                        # (BB, S, C), already in compute dtype
    cdt = x3.dtype
    qT = q_ref[0]                          # (hd, N), compute dtype, pre-scaled

    # Per-head K / V projections: outputs land directly in per-head layout, so
    # no lane-unaligned slicing of a fused KV tensor.  f32 accumulate + f32
    # bias add, then a single cast to the compute dtype.
    kh = (jnp.einsum("bsc,ch->bsh", x3, wk_ref[0],
                     preferred_element_type=jnp.float32)
          + bk_ref[0]).astype(cdt)                               # (BB, S, hd)
    vh = (jnp.einsum("bsc,ch->bsh", x3, wv_ref[0],
                     preferred_element_type=jnp.float32)
          + bv_ref[0]).astype(cdt)                               # (BB, S, hd)

    # Scores with q_h^T as the stationary RHS: one matmul with M = BB*S and no
    # materialized q broadcast.  The attention scale is folded into q.
    s = jnp.einsum("bsh,hn->bsn", kh, qT,
                   preferred_element_type=jnp.float32)           # (BB, S, N)

    # Softmax over the source-token axis (axis=1).
    s = s - jnp.max(s, axis=1, keepdims=True)
    p = jnp.exp(s)
    denom = jnp.sum(p, axis=1, keepdims=True)                    # (BB, 1, N)
    if approx_recip:
        p = p * pl.reciprocal(denom, approx=True)                # EUP slot
    else:
        p = p / denom                                            # exact f32 path

    # ctx[b, n, d] = sum_s p[b, s, n] * v[b, s, d]
    ctx = jnp.einsum("bsn,bsh->bnh", p.astype(cdt), vh,
                     preferred_element_type=jnp.float32)         # (BB, N, hd)

    # Accumulate this head's slice of the output projection.
    acc_ref[...] += jnp.einsum("bnh,hc->bnc", ctx.astype(cdt), wp_ref[0],
                               preferred_element_type=jnp.float32)

    @pl.when(h == pl.num_programs(1) - 1)
    def _():
        o_ref[...] = acc_ref[...].astype(o_ref.dtype)


def _vmem_estimate_bytes(block_b, S, C, N, hd, cdt_size, out_size):
    """Rough per-grid-step VMEM footprint (blocks + in-kernel temporaries)."""
    per_b = (2 * S * C * cdt_size            # x block (double-buffered)
             + 2 * N * C * out_size          # out block (double-buffered)
             + N * C * 4                     # f32 accumulator scratch
             + 2 * S * N * 4                 # scores + probs (f32)
             + 2 * S * hd * (4 + cdt_size)   # k, v per head (f32 + cast copy)
             + N * hd * (4 + cdt_size)       # ctx
             + N * C * 4)                    # per-head projection temp
    fixed = (2 * cdt_size * (hd * N + 2 * C * hd + hd * C)  # q, Wk, Wv, Wp blocks
             + N * C * 4                                     # residual
             + 4 * C * 4)                                    # biases
    return fixed + block_b * per_b


def k2l_recovery_pallas(x, x_token, params, *, num_heads, block_b=None,
                        compute_dtype=jnp.bfloat16):
    """x: (B, S, C); x_token: (N, C); params: dict of (C_in, C_out)/(1, C_out)."""
    B, S, C = x.shape
    N, _ = x_token.shape
    assert C % num_heads == 0, "embed_dim must be divisible by num_heads"
    hd = C // num_heads
    scale = hd ** (-0.5)
    out_dtype = x.dtype
    cdt = jnp.dtype(compute_dtype)
    approx_recip = (cdt == jnp.dtype(jnp.bfloat16))
    f32 = jnp.float32

    # Batch-invariant Q projection hoisted out of the kernel; attention scale
    # folded into q; heads pre-split and pre-transposed so the kernel sees
    # q_h^T (hd, N) directly as a matmul RHS.
    q = x_token.astype(f32) @ params["wq"].astype(f32) + params["bq"].astype(f32)
    q_heads = (q * scale).reshape(N, num_heads, hd).transpose(1, 2, 0).astype(cdt)

    # Per-head K / V / proj weights (leading head axis -> free ref indexing;
    # BlockSpec streams one head's tiles per grid step).
    wk_heads = params["wk"].astype(cdt).reshape(C, num_heads, hd).transpose(1, 0, 2)
    wv_heads = params["wv"].astype(cdt).reshape(C, num_heads, hd).transpose(1, 0, 2)
    bk_heads = params["bk"].astype(f32).reshape(num_heads, 1, hd)
    bv_heads = params["bv"].astype(f32).reshape(num_heads, 1, hd)
    wp_heads = params["wp"].astype(cdt).reshape(num_heads, hd, C)

    # Residual + output-projection bias pre-added -> one (N, C) tensor.
    resid = (x_token.astype(f32) + params["bp"].astype(f32))

    # Activations pre-cast so the kernel never re-casts x per head.
    xc = x.astype(cdt)

    cdt_size = cdt.itemsize
    out_size = jnp.dtype(out_dtype).itemsize

    # Batch blocking from a VMEM budget; prefer >=2 grid steps and an even
    # grid count (v7x has 2 TensorCores), otherwise the largest feasible block
    # (extra steps on single-TC chips cost only ~0.35 us each).
    if block_b is None:
        budget = 40 * 1024 * 1024
        divisors = [d for d in range(1, B + 1) if B % d == 0]
        feasible = [d for d in divisors
                    if _vmem_estimate_bytes(d, S, C, N, hd, cdt_size, out_size)
                    <= budget] or [1]
        multi = [d for d in feasible if B // d >= 2]
        pool = multi or feasible
        even = [d for d in pool if (B // d) % 2 == 0]
        block_b = max(even or pool)
    assert B % block_b == 0, "block_b must divide B"
    grid_b = B // block_b

    vmem_limit = int(min(64 * 1024 * 1024,
                         max(32 * 1024 * 1024,
                             2 * _vmem_estimate_bytes(block_b, S, C, N, hd,
                                                      cdt_size, out_size))))

    flops = int(4 * B * S * C * C          # K/V projections
                + 4 * B * N * S * C        # QK^T and attn@V across heads
                + 2 * B * N * C * C)       # output projection
    transcendentals = int(B * num_heads * N * S)
    bytes_accessed = int(cdt_size * (B * S * C + 3 * C * C + num_heads * hd * N)
                         + out_size * B * N * C
                         + 4 * (N * C + 2 * C))

    kernel = functools.partial(k2l_recovery_kernel, approx_recip=approx_recip)

    return pl.pallas_call(
        kernel,
        out_shape=jax.ShapeDtypeStruct((B, N, C), out_dtype),
        grid_spec=pltpu.PrefetchScalarGridSpec(
            num_scalar_prefetch=0,
            grid=(grid_b, num_heads),
            in_specs=[
                pl.BlockSpec((1, hd, N), lambda b, h: (h, 0, 0)),        # q_h^T
                pl.BlockSpec((N, C), lambda b, h: (0, 0)),               # resid
                pl.BlockSpec((block_b, S, C), lambda b, h: (b, 0, 0)),   # x
                pl.BlockSpec((1, C, hd), lambda b, h: (h, 0, 0)),        # Wk_h
                pl.BlockSpec((1, C, hd), lambda b, h: (h, 0, 0)),        # Wv_h
                pl.BlockSpec((1, 1, hd), lambda b, h: (h, 0, 0)),        # bk_h
                pl.BlockSpec((1, 1, hd), lambda b, h: (h, 0, 0)),        # bv_h
                pl.BlockSpec((1, hd, C), lambda b, h: (h, 0, 0)),        # Wp_h
            ],
            out_specs=pl.BlockSpec((block_b, N, C), lambda b, h: (b, 0, 0)),
            scratch_shapes=[pltpu.VMEM((block_b, N, C), jnp.float32)],
        ),
        compiler_params=pltpu.CompilerParams(
            dimension_semantics=("parallel", "arbitrary"),
            vmem_limit_bytes=vmem_limit),
        cost_estimate=pl.CostEstimate(flops=flops,
                                      transcendentals=transcendentals,
                                      bytes_accessed=bytes_accessed),
    )(q_heads, resid, xc, wk_heads, wv_heads, bk_heads, bv_heads, wp_heads)


def k2l_recovery_reference(x, x_token, params, *, num_heads):
    """Plain-JAX reference mirroring the PyTorch forward."""
    B, S, C = x.shape
    N, _ = x_token.shape
    hd = C // num_heads
    scale = hd ** (-0.5)
    xt = jnp.broadcast_to(x_token[None], (B, N, C))

    q = xt @ params["wq"] + params["bq"]
    k = x @ params["wk"] + params["bk"]
    v = x @ params["wv"] + params["bv"]

    q = q.reshape(B, N, num_heads, hd).transpose(0, 2, 1, 3)
    k = k.reshape(B, S, num_heads, hd).transpose(0, 2, 1, 3)
    v = v.reshape(B, S, num_heads, hd).transpose(0, 2, 1, 3)

    attn = jnp.einsum("bhnd,bhsd->bhns", q, k) * scale
    attn = jax.nn.softmax(attn, axis=-1)
    ctx = jnp.einsum("bhns,bhsd->bhnd", attn, v)
    ctx = ctx.transpose(0, 2, 1, 3).reshape(B, N, C)
    proj = ctx @ params["wp"] + params["bp"]
    return xt + proj


if __name__ == "__main__":
    # Small shapes consistent with the module (defaults 256/192/8 scaled down).
    B, S, C = 4, 16, 32          # batch, source tokens (x), embed dim
    N = 32                       # num_tokens (recovered query tokens)
    num_heads = 4                # head_dim = 8

    key = jax.random.PRNGKey(0)
    keys = jax.random.split(key, 8)

    x = jax.random.normal(keys[0], (B, S, C), dtype=jnp.float32)
    # x_token is a learned parameter; use small random values so the residual
    # path is exercised.
    x_token = 0.02 * jax.random.normal(keys[1], (N, C), dtype=jnp.float32)

    def linear_params(k):
        kw, kb = jax.random.split(k)
        w = 0.05 * jax.random.normal(kw, (C, C), dtype=jnp.float32)  # (C_in, C_out) == W.T
        b = 0.05 * jax.random.normal(kb, (1, C), dtype=jnp.float32)
        return w, b

    wq, bq = linear_params(keys[2])   # qkv_bias=True
    wk, bk = linear_params(keys[3])
    wv, bv = linear_params(keys[4])
    wp, bp = linear_params(keys[5])   # proj always has bias

    params = dict(wq=wq, bq=bq, wk=wk, bk=bk, wv=wv, bv=bv, wp=wp, bp=bp)

    ref = k2l_recovery_reference(x, x_token, params, num_heads=num_heads)

    # f32 compute path: tight check (exact softmax division is used here).
    out_f32 = k2l_recovery_pallas(x, x_token, params, num_heads=num_heads,
                                  compute_dtype=jnp.float32)
    out_f32 = jax.block_until_ready(out_f32)
    assert out_f32.shape == (B, N, C)
    assert jnp.allclose(out_f32, ref, atol=1e-3, rtol=1e-3), "f32 mismatch vs reference"

    # Default bf16-matmul path (what v6e/v7x use): looser check (inputs quantize).
    out_bf16 = k2l_recovery_pallas(x, x_token, params, num_heads=num_heads)
    out_bf16 = jax.block_until_ready(out_bf16)
    assert out_bf16.shape == (B, N, C)
    assert jnp.allclose(out_bf16, ref, atol=3e-2, rtol=3e-2), "bf16 mismatch vs reference"

    print("KERNEL_OK")
</pallas_src>

<mosaic_0001>
module attributes {stable_mosaic.version = 11 : i64} {
  func.func @k2l_recovery_kernel(%arg0: i32, %arg1: i32, %arg2: memref<1x8x32xf32, #tpu.memory_space<vmem>>, %arg3: memref<32x32xf32, #tpu.memory_space<vmem>>, %arg4: memref<2x16x32xf32, #tpu.memory_space<vmem>>, %arg5: memref<1x32x8xf32, #tpu.memory_space<vmem>>, %arg6: memref<1x32x8xf32, #tpu.memory_space<vmem>>, %arg7: memref<1x1x8xf32, #tpu.memory_space<vmem>>, %arg8: memref<1x1x8xf32, #tpu.memory_space<vmem>>, %arg9: memref<1x8x32xf32, #tpu.memory_space<vmem>>, %arg10: memref<2x32x32xf32, #tpu.memory_space<vmem>>, %arg11: memref<2x32x32xf32, #tpu.memory_space<vmem>>) attributes {dimension_semantics = [#tpu.dimension_semantics<parallel>, #tpu.dimension_semantics<arbitrary>], iteration_bounds = array<i64: 2, 4>, scalar_prefetch = 0 : i64, scratch_operands = 1 : i64, tpu.core_type = #tpu.core_type<tc>, window_params = [{transform_indices = @transform_0, window_bounds = array<i64: 1, 8, 32>}, {pipeline_mode = #tpu.pipeline_mode<synchronous>, transform_indices = @transform_1, window_bounds = array<i64: 32, 32>}, {transform_indices = @transform_2, window_bounds = array<i64: 2, 16, 32>}, {transform_indices = @transform_3, window_bounds = array<i64: 1, 32, 8>}, {transform_indices = @transform_4, window_bounds = array<i64: 1, 32, 8>}, {transform_indices = @transform_5, window_bounds = array<i64: 1, 1, 8>}, {transform_indices = @transform_6, window_bounds = array<i64: 1, 1, 8>}, {transform_indices = @transform_7, window_bounds = array<i64: 1, 8, 32>}, {transform_indices = @transform_8, window_bounds = array<i64: 2, 32, 32>}]} {
    %c0_i32 = arith.constant 0 : i32
    %0 = arith.cmpi eq, %arg1, %c0_i32 : i32
    %1 = arith.extui %0 : i1 to i32
    %c0_i32_0 = arith.constant 0 : i32
    %2 = arith.cmpi ne, %1, %c0_i32_0 : i32
    scf.if %2 {
      %c0_34 = arith.constant 0 : index
      %c0_35 = arith.constant 0 : index
      %42 = vector.load %arg3[%c0_34, %c0_35] : memref<32x32xf32, #tpu.memory_space<vmem>>, vector<32x32xf32>
      %43 = vector.shape_cast %42 : vector<32x32xf32> to vector<1x32x32xf32>
      %44 = vector.shape_cast %43 : vector<1x32x32xf32> to vector<1x32x32xf32>
      %45 = vector.broadcast %44 : vector<1x32x32xf32> to vector<2x32x32xf32>
      %c0_36 = arith.constant 0 : index
      %c0_37 = arith.constant 0 : index
      %c0_38 = arith.constant 0 : index
      %46 = vector.load %arg11[%c0_36, %c0_37, %c0_38] : memref<2x32x32xf32, #tpu.memory_space<vmem>>, vector<2x32x32xf32>
      tpu.vector_store %arg11[%c0_36, %c0_37, %c0_38], %45 {strides = array<i32>} : memref<2x32x32xf32, #tpu.memory_space<vmem>>, vector<2x32x32xf32>,
    } else {
    }
    %c0 = arith.constant 0 : index
    %c0_1 = arith.constant 0 : index
    %c0_2 = arith.constant 0 : index
    %3 = vector.load %arg4[%c0, %c0_1, %c0_2] : memref<2x16x32xf32, #tpu.memory_space<vmem>>, vector<2x16x32xf32>
    %c0_3 = arith.constant 0 : index
    %c0_4 = arith.constant 0 : index
    %c0_5 = arith.constant 0 : index
    %4 = vector.load %arg2[%c0_3, %c0_4, %c0_5] : memref<1x8x32xf32, #tpu.memory_space<vmem>>, vector<1x8x32xf32>
    %5 = vector.shape_cast %4 : vector<1x8x32xf32> to vector<8x32xf32>
    %c0_6 = arith.constant 0 : index
    %c0_7 = arith.constant 0 : index
    %c0_8 = arith.constant 0 : index
    %6 = vector.load %arg5[%c0_6, %c0_7, %c0_8] : memref<1x32x8xf32, #tpu.memory_space<vmem>>, vector<1x32x8xf32>
    %7 = vector.shape_cast %6 : vector<1x32x8xf32> to vector<32x8xf32>
    "tpu.trace_start"() <{level = 10 : i32, message = "bsc,ch->bsh"}> : () -> ()
    %cst = arith.constant dense<0.000000e+00> : vector<2x16x8xf32>
    %8 = tpu.matmul %3, %7, %cst {dimension_numbers = #tpu.dot_dimension_numbers<[2], [0], [0, 1], [1], [0, 0, 0, 1, 1, 1], [], []>} : vector<2x16x32xf32>, vector<32x8xf32>, vector<2x16x8xf32> -> vector<2x16x8xf32>
    "tpu.trace_stop"() : () -> ()
    %c0_9 = arith.constant 0 : index
    %c0_10 = arith.constant 0 : index
    %c0_11 = arith.constant 0 : index
    %9 = vector.load %arg7[%c0_9, %c0_10, %c0_11] : memref<1x1x8xf32, #tpu.memory_space<vmem>>, vector<1x1x8xf32>
    %10 = vector.shape_cast %9 : vector<1x1x8xf32> to vector<1x8xf32>
    %11 = vector.shape_cast %10 : vector<1x8xf32> to vector<1x1x8xf32>
    %12 = vector.broadcast %11 : vector<1x1x8xf32> to vector<2x16x8xf32>
    %13 = arith.addf %8, %12 : vector<2x16x8xf32>
    %c0_12 = arith.constant 0 : index
    %c0_13 = arith.constant 0 : index
    %c0_14 = arith.constant 0 : index
    %14 = vector.load %arg6[%c0_12, %c0_13, %c0_14] : memref<1x32x8xf32, #tpu.memory_space<vmem>>, vector<1x32x8xf32>
    %15 = vector.shape_cast %14 : vector<1x32x8xf32> to vector<32x8xf32>
    "tpu.trace_start"() <{level = 10 : i32, message = "bsc,ch->bsh"}> : () -> ()
    %cst_15 = arith.constant dense<0.000000e+00> : vector<2x16x8xf32>
    %16 = tpu.matmul %3, %15, %cst_15 {dimension_numbers = #tpu.dot_dimension_numbers<[2], [0], [0, 1], [1], [0, 0, 0, 1, 1, 1], [], []>} : vector<2x16x32xf32>, vector<32x8xf32>, vector<2x16x8xf32> -> vector<2x16x8xf32>
    "tpu.trace_stop"() : () -> ()
    %c0_16 = arith.constant 0 : index
    %c0_17 = arith.constant 0 : index
    %c0_18 = arith.constant 0 : index
    %17 = vector.load %arg8[%c0_16, %c0_17, %c0_18] : memref<1x1x8xf32, #tpu.memory_space<vmem>>, vector<1x1x8xf32>
    %18 = vector.shape_cast %17 : vector<1x1x8xf32> to vector<1x8xf32>
    %19 = vector.shape_cast %18 : vector<1x8xf32> to vector<1x1x8xf32>
    %20 = vector.broadcast %19 : vector<1x1x8xf32> to vector<2x16x8xf32>
    %21 = arith.addf %16, %20 : vector<2x16x8xf32>
    "tpu.trace_start"() <{level = 10 : i32, message = "bsh,hn->bsn"}> : () -> ()
    %cst_19 = arith.constant dense<0.000000e+00> : vector<2x16x32xf32>
    %22 = tpu.matmul %13, %5, %cst_19 {dimension_numbers = #tpu.dot_dimension_numbers<[2], [0], [0, 1], [1], [0, 0, 0, 1, 1, 1], [], []>} : vector<2x16x8xf32>, vector<8x32xf32>, vector<2x16x32xf32> -> vector<2x16x32xf32>
    "tpu.trace_stop"() : () -> ()
    %cst_20 = arith.constant dense<0xFF800000> : vector<2x32xf32>
    %23 = vector.multi_reduction <maximumf>, %22, %cst_20 [1] : vector<2x16x32xf32> to vector<2x32xf32>
    %24 = vector.shape_cast %23 : vector<2x32xf32> to vector<2x1x32xf32>
    %25 = vector.broadcast %24 : vector<2x1x32xf32> to vector<2x16x32xf32>
    %26 = arith.subf %22, %25 : vector<2x16x32xf32>
    %27 = math.exp %26 : vector<2x16x32xf32>
    %cst_21 = arith.constant dense<0.000000e+00> : vector<2x32xf32>
    %28 = vector.multi_reduction <add>, %27, %cst_21 [1] : vector<2x16x32xf32> to vector<2x32xf32>
    %29 = vector.shape_cast %28 : vector<2x32xf32> to vector<2x1x32xf32>
    %30 = vector.broadcast %29 : vector<2x1x32xf32> to vector<2x16x32xf32>
    %31 = arith.divf %27, %30 : vector<2x16x32xf32>
    "tpu.trace_start"() <{level = 10 : i32, message = "bsn,bsh->bnh"}> : () -> ()
    %cst_22 = arith.constant dense<0.000000e+00> : vector<2x32x8xf32>
    %32 = tpu.matmul %31, %21, %cst_22 {dimension_numbers = #tpu.dot_dimension_numbers<[1], [1], [2], [2], [0, 0, 0, 2, 1, 2], [0], [0]>} : vector<2x16x32xf32>, vector<2x16x8xf32>, vector<2x32x8xf32> -> vector<2x32x8xf32>
    "tpu.trace_stop"() : () -> ()
    %c0_23 = arith.constant 0 : index
    %c0_24 = arith.constant 0 : index
    %c0_25 = arith.constant 0 : index
    %33 = vector.load %arg11[%c0_23, %c0_24, %c0_25] : memref<2x32x32xf32, #tpu.memory_space<vmem>>, vector<2x32x32xf32>
    %c0_26 = arith.constant 0 : index
    %c0_27 = arith.constant 0 : index
    %c0_28 = arith.constant 0 : index
    %34 = vector.load %arg9[%c0_26, %c0_27, %c0_28] : memref<1x8x32xf32, #tpu.memory_space<vmem>>, vector<1x8x32xf32>
    %35 = vector.shape_cast %34 : vector<1x8x32xf32> to vector<8x32xf32>
    "tpu.trace_start"() <{level = 10 : i32, message = "bnh,hc->bnc"}> : () -> ()
    %cst_29 = arith.constant dense<0.000000e+00> : vector<2x32x32xf32>
    %36 = tpu.matmul %32, %35, %cst_29 {dimension_numbers = #tpu.dot_dimension_numbers<[2], [0], [0, 1], [1], [0, 0, 0, 1, 1, 1], [], []>} : vector<2x32x8xf32>, vector<8x32xf32>, vector<2x32x32xf32> -> vector<2x32x32xf32>
    "tpu.trace_stop"() : () -> ()
    %37 = arith.addf %33, %36 : vector<2x32x32xf32>
    %c0_30 = arith.constant 0 : index
    %c0_31 = arith.constant 0 : index
    %c0_32 = arith.constant 0 : index
    %38 = vector.load %arg11[%c0_30, %c0_31, %c0_32] : memref<2x32x32xf32, #tpu.memory_space<vmem>>, vector<2x32x32xf32>
    tpu.vector_store %arg11[%c0_30, %c0_31, %c0_32], %37 {strides = array<i32>} : memref<2x32x32xf32, #tpu.memory_space<vmem>>, vector<2x32x32xf32>,
    %c3_i32 = arith.constant 3 : i32
    %39 = arith.cmpi eq, %arg1, %c3_i32 : i32
    %40 = arith.extui %39 : i1 to i32
    %c0_i32_33 = arith.constant 0 : i32
    %41 = arith.cmpi ne, %40, %c0_i32_33 : i32
    scf.if %41 {
      %c0_34 = arith.constant 0 : index
      %c0_35 = arith.constant 0 : index
      %c0_36 = arith.constant 0 : index
      %42 = vector.load %arg11[%c0_34, %c0_35, %c0_36] : memref<2x32x32xf32, #tpu.memory_space<vmem>>, vector<2x32x32xf32>
      %c0_37 = arith.constant 0 : index
      %c0_38 = arith.constant 0 : index
      %c0_39 = arith.constant 0 : index
      %43 = vector.load %arg10[%c0_37, %c0_38, %c0_39] : memref<2x32x32xf32, #tpu.memory_space<vmem>>, vector<2x32x32xf32>
      tpu.vector_store %arg10[%c0_37, %c0_38, %c0_39], %42 {strides = array<i32>} : memref<2x32x32xf32, #tpu.memory_space<vmem>>, vector<2x32x32xf32>,
    } else {
    }
    return
  }
  func.func @transform_0(%arg0: i32, %arg1: i32) -> (i32, i32, i32) {
    %c0_i32 = arith.constant 0 : i32
    %c0_i32_0 = arith.constant 0 : i32
    %c0_i32_1 = arith.constant 0 : i32
    return %arg1, %c0_i32, %c0_i32_0 : i32, i32, i32
  }
  func.func @transform_1(%arg0: i32, %arg1: i32) -> (i32, i32) {
    %c0_i32 = arith.constant 0 : i32
    %c0_i32_0 = arith.constant 0 : i32
    %c0_i32_1 = arith.constant 0 : i32
    return %c0_i32, %c0_i32_0 : i32, i32
  }
  func.func @transform_2(%arg0: i32, %arg1: i32) -> (i32, i32, i32) {
    %c0_i32 = arith.constant 0 : i32
    %c0_i32_0 = arith.constant 0 : i32
    %c0_i32_1 = arith.constant 0 : i32
    return %arg0, %c0_i32, %c0_i32_0 : i32, i32, i32
  }
  func.func @transform_3(%arg0: i32, %arg1: i32) -> (i32, i32, i32) {
    %c0_i32 = arith.constant 0 : i32
    %c0_i32_0 = arith.constant 0 : i32
    %c0_i32_1 = arith.constant 0 : i32
    return %arg1, %c0_i32, %c0_i32_0 : i32, i32, i32
  }
  func.func @transform_4(%arg0: i32, %arg1: i32) -> (i32, i32, i32) {
    %c0_i32 = arith.constant 0 : i32
    %c0_i32_0 = arith.constant 0 : i32
    %c0_i32_1 = arith.constant 0 : i32
    return %arg1, %c0_i32, %c0_i32_0 : i32, i32, i32
  }
  func.func @transform_5(%arg0: i32, %arg1: i32) -> (i32, i32, i32) {
    %c0_i32 = arith.constant 0 : i32
    %c0_i32_0 = arith.constant 0 : i32
    %c0_i32_1 = arith.constant 0 : i32
    return %arg1, %c0_i32, %c0_i32_0 : i32, i32, i32
  }
  func.func @transform_6(%arg0: i32, %arg1: i32) -> (i32, i32, i32) {
    %c0_i32 = arith.constant 0 : i32
    %c0_i32_0 = arith.constant 0 : i32
    %c0_i32_1 = arith.constant 0 : i32
    return %arg1, %c0_i32, %c0_i32_0 : i32, i32, i32
  }
  func.func @transform_7(%arg0: i32, %arg1: i32) -> (i32, i32, i32) {
    %c0_i32 = arith.constant 0 : i32
    %c0_i32_0 = arith.constant 0 : i32
    %c0_i32_1 = arith.constant 0 : i32
    return %arg1, %c0_i32, %c0_i32_0 : i32, i32, i32
  }
  func.func @transform_8(%arg0: i32, %arg1: i32) -> (i32, i32, i32) {
    %c0_i32 = arith.constant 0 : i32
    %c0_i32_0 = arith.constant 0 : i32
    %c0_i32_1 = arith.constant 0 : i32
    return %arg0, %c0_i32, %c0_i32_0 : i32, i32, i32
  }
}

</mosaic_0001>

<bundles_post_ra>
// kernel: tpu_custom_call.1
= control target key start
LH: loop header
LB: loop body
LE: loop exit
PB: predicated region body
PF: predicated region fallthrough
CT: control target
= control target key end

     0   :  { %s2093_s0 = inlined_call_operand.vmem [shape: f32[4,8,32], index: 0, kind: input, shape index: {}]   ;;  %s2094_s1 = inlined_call_operand.vmem [shape: f32[32,32], index: 1, kind: input, shape index: {}]   ;;  %s2095_s2 = inlined_call_operand.vmem [shape: f32[4,16,32], index: 2, kind: input, shape index: {}]   ;;  %s2096_s3 = inlined_call_operand.vmem [shape: f32[4,32,8], index: 3, kind: input, shape index: {}]   ;;  %s2097_s4 = inlined_call_operand.vmem [shape: f32[4,32,8], index: 4, kind: input, shape index: {}]   ;;  %s2098_s5 = inlined_call_operand.vmem [shape: f32[4,1,8], index: 5, kind: input, shape index: {}]   ;;  %s2099_s6 = inlined_call_operand.vmem [shape: f32[4,1,8], index: 6, kind: input, shape index: {}]   ;;  %s2100_s7 = inlined_call_operand.vmem [shape: f32[4,8,32], index: 7, kind: input, shape index: {}]   ;;  %s2101_s8 = inlined_call_operand.hbm [shape: f32[4,32,32], index: 8, kind: output, shape index: {}]  }
   0x1   :  { %2114 = sst [smem:[#allocation16_spill]] %s2093_s0 }
   0x2   :  { %2115 = sst [smem:[#allocation17_spill]] %s2101_s8 }
   0x3   :  { %13 = vsyncpa [#allocation4], 0 }
   0x4   :  { %15 = vsyncpa [#allocation4 + $0x1], 0  ;;  %s1818_s27 = smov 0   ;;  %s1820_s28 = smov 0  }
   0x5   :  { %s1822_s29 = smov 0   ;;  %s1824_s30 = smov 0  }
   0x6   :  { %s1826_s9 = smov 0   ;;  %s1828_s10 = smov 0  }
   0x7   :  { %s1830_s11 = smov 0   ;;  %s1832_s12 = smov 0  }
   0x8 LB: > { %2116 = sst [smem:[#allocation6_spill]] %s1740_s27  ;;  %s1390_s13 = sadd.s32 4294967295, %s1768_s12   ;;  %s1768_s12 = sphi %s1832_s12, %s21_s12   ;;  %s1764_s11 = sphi %s1830_s11, %s2140_s11   ;;  %s1760_s10 = sphi %s1828_s10, %s2139_s10   ;;  %s1756_s9 = sphi %s1826_s9, %s2138_s9   ;;  %s1752_s30 = sphi %s1824_s30, %s2137_s30   ;;  %s1748_s29 = sphi %s1822_s29, %s2136_s29   ;;  %s1744_s28 = sphi %s1820_s28, %s2142_s28   ;;  %s1740_s27 = sphi %s1818_s27, %s2141_s27  }
   0x9   : > { %2117 = sst [smem:[#allocation7_spill]] %s1748_s29  ;;  %s1391_s14 = sadd.s32 4294967294, %s1768_s12  }
   0xa   : > { %2118 = sst [smem:[#allocation8_spill]] %s1760_s10  ;;  %s30_s15 = sadd.s32 1, %s1760_s10 }
   0xb   : > { %2119 = sst [smem:[#allocation9_spill]] %s1764_s11  ;;  %p31_p0 = scmp.ge.s32.totalorder %s30_s15, 4 }
   0xc   : > { %2120 = sst [smem:[#allocation10_spill]] %s1768_s12  ;;  %s33_s16 = sadd.s32 1, %s1764_s11 }
   0xd   : > { %p253_p1 = scmp.ne.s32.totalorder %s1748_s29, %s1744_s28  ;;  %p254_p2 = scmp.eq.s32.totalorder %s1390_s13, 7 }
   0xe   : > { %s2144_s15 = smov (%p31_p0, %s30_s15), 0  ;;  %s2146_s16 = smov (!%p31_p0, %s33_s16), %s1764_s11 }
   0xf   : > { %2121 = sst [smem:[#allocation11_spill]] %s2144_s15  ;;  %p1867_p3 = por %p254_p2, %p253_p1 }
  0x10   : > { %p259_p4 = scmp.ne.s32.totalorder %s1744_s28, %s1740_s27  ;;  %p35_p5 = scmp.ge.s32.totalorder %s2146_s16, 2 }
  0x11   : > { %s2122_s17 = scalar_select %p1867_p3, 1, 0 }
  0x12   : > { %p260_p6 = scmp.eq.s32.totalorder %s1391_s14, 7  ;;  %p1394_p7 = scmp.ge.s32.totalorder %s1768_s12, 1 }
  0x13   : > { %2123 = sst [smem:[#allocation12_spill]] %s2122_s17  ;;  %p333_p8 = scmp.lt.s32.totalorder %s1768_s12, 9 }
  0x14   : > { %s2148_s16 = smov (%p35_p5, %s2146_s16), 0  ;;  %p1877_p9 = por %p260_p6, %p259_p4 }
  0x15   : > { %2124 = sst [smem:[#allocation13_spill]] %s2148_s16  ;;  %p334_p10 = pnand %p1394_p7, %p333_p8 }
  0x16   : > { %s2125_s18 = scalar_select %p1877_p9, 1, 0 }
  0x17   : > { %s240_s19 = ssub.s32 %s1764_s11, %s2148_s16  ;;  %s243_s20 = sadd.s32 1, %s1748_s29 }
  0x18   : > { %2126 = sst [smem:[#allocation14_spill]] %s2125_s18  ;;  %p241_p11 = scmp.eq.s32.totalorder %s240_s19, 0 }
  0x19   : > { %337 = sbr.rel (%p334_p10) target bundleno = 1153 (0x481), region = 52  ;;  %s2104_s22 = sand.u32 (!%p334_p10), 1, %s1744_s28  }
  0x1a   : > { %s1885_s21 = scalar_select %p241_p11, %s1748_s29, %s243_s20  }
  0x1b   : > { %p392_p12 = scmp.lt.s32.totalorder (!%p334_p10), %s1752_s30, 3  ;;  %s1395_s23 = sshll.u32 (!%p334_p10), %s2104_s22, 6 }
  0x1c   : > { %2127 = sst [smem:[#allocation15_spill]] %s1885_s21  ;;  %s1397_s24 = sshll.u32 (!%p334_p10), %s1756_s9, 1 }
  0x1d   : > { %p397_p13 = scmp.lt.s32.totalorder (!%p334_p10), %s1397_s24, 3  ;;  %s2128_s0 = sld [smem:[#allocation16_spill]] (!%p334_p10) }
  0x1e   : > { %s1928_s10 = scalar_lea.vmem (!%p334_p10), [#allocation3], %s1395_s23  ;;  %p1405_p0 = scmp.ne.s32.totalorder (!%p334_p10), %s1752_s30, 0 }
  0x20   : > { %s1893_s25 = scalar_select %p392_p12, %s1752_s30, 3 }
  0x21   : > { %s2150_s24 = smov (!%p397_p13, %s1397_s24), 3  ;;  %427 = sbr.rel (%p1405_p0) target bundleno = 40 (0x28), region = 56 }
  0x22   : > { %s1396_s26 = sshll.u32 %s1893_s25, 3  ;;  %s1444_s13 = sshll.u32 %s1893_s25, 5  ;;  %v428_v0 = vld [vmem:[%s2094_s1] sm:$0xff] (!%p1405_p0)  ;;  %vm432_vm0 = vcmask (!%p1405_p0), 261120   ;;  %v429_v1 = vld [vmem:[%s2094_s1 + $0x8] sm:$0xff] (!%p1405_p0)  ;;  %v430_v2 = vld [vmem:[%s2094_s1 + $0x10] sm:$0xff] (!%p1405_p0) }
  0x23   : > { %s1900_s20 = scalar_lea.vmem %s2128_s0, %s1396_s26  ;;  %s1443_s16 = sshll.u32 %s2150_s24, 4  ;;  %433 = vst.msk [vmem:[#allocation2] sm:$0xff] (!%p1405_p0), %vm432_vm0, %v428_v0  ;;  %437 = vst.msk [vmem:[#allocation2 + $0x20] sm:$0xff] (!%p1405_p0), %vm432_vm0, %v428_v0  ;;  %v431_v3 = vld [vmem:[%s2094_s1 + $0x18] sm:$0xff] (!%p1405_p0) }
  0x24   : > { %s1905_s22 = scalar_lea.vmem %s2095_s2, %s1443_s16  ;;  %s407_s29 = scalar_lea.vmem %s2096_s3, %s1444_s13  ;;  %434 = vst.msk [vmem:[#allocation2 + $0x8] sm:$0xff] (!%p1405_p0), %vm432_vm0, %v429_v1  ;;  %438 = vst.msk [vmem:[#allocation2 + $0x28] sm:$0xff] (!%p1405_p0), %vm432_vm0, %v429_v1 }
  0x25   : > { %s1913_s12 = scalar_lea.vmem %s2097_s4, %s1444_s13  ;;  %s415_s14 = scalar_lea.vmem %s2098_s5, %s1893_s25  ;;  %435 = vst.msk [vmem:[#allocation2 + $0x10] sm:$0xff] (!%p1405_p0), %vm432_vm0, %v430_v2  ;;  %439 = vst.msk [vmem:[#allocation2 + $0x30] sm:$0xff] (!%p1405_p0), %vm432_vm0, %v430_v2 }
  0x26   : > { %s418_s0 = scalar_lea.vmem %s2099_s6, %s1893_s25  ;;  %s1926_s16 = scalar_lea.vmem %s2100_s7, %s1396_s26  ;;  %436 = vst.msk [vmem:[#allocation2 + $0x18] sm:$0xff] (!%p1405_p0), %vm432_vm0, %v431_v3  ;;  %440 = vst.msk [vmem:[#allocation2 + $0x38] sm:$0xff] (!%p1405_p0), %vm432_vm0, %v431_v3 }
  0x28 PF: > { %v446_v4 = vld [vmem:[%s407_s29] sm:$0xff]  ;;  %v447_v5 = vld [vmem:[%s407_s29 + $0x8] sm:$0xff]  ;;  %v448_v6 = vld [vmem:[%s407_s29 + $0x10] sm:$0xff]  ;;  %vm457_vm1 = vcmask 261120   ;;  %vm651_vm2 = vcmask 64512   ;;  %vm835_vm3 = vcmask 130048  }
  0x29   : > { %v1560_v7 = vpack.c.bf16 %v447_v5, %v446_v4  ;;  %v449_v8 = vld [vmem:[%s407_s29 + $0x18] sm:$0xff]  ;;  %v441_v9 = vld [vmem:[%s1905_s22] sm:$0xff]  ;;  %v443_v11 = vld [vmem:[%s1905_s22 + $0x10] sm:$0xff]  ;;  %p1436_p1 = scmp.ne.s32.totalorder %s1752_s30, 3 }
  0x2a   : > { %v1564_v10 = vpack.c.bf16 %v449_v8, %v448_v6  ;;  %1498 = vmatprep.mubr.msk.f32.mxu0 %vm457_vm1, %v441_v9  ;;  %v555_v12 = vld [vmem:[%s1913_s12] sm:$0xff]  ;;  %v556_v13 = vld [vmem:[%s1913_s12 + $0x8] sm:$0xff]  ;;  %v557_v14 = vld [vmem:[%s1913_s12 + $0x10] sm:$0xff]  ;;  %1515 = vmatprep.mubr.msk.f32.mxu1 %vm457_vm1, %v443_v11 }
  0x2b   : > { %1561 = vmatprep.subr.bf16.mxu0 %v1560_v7  ;;  %v558_v15 = vld [vmem:[%s1913_s12 + $0x18] sm:$0xff]  ;;  %v1568_v16 = vpack.c.bf16 %v556_v13, %v555_v12  ;;  %v442_v18 = vld [vmem:[%s1905_s22 + $0x8] sm:$0xff]  ;;  %v445_v20 = vld [vmem:[%s1900_s20] sm:$0xff] }
  0x2c   : > { %1563 = vmatpush3.bf16.msra.mxu0 %v1560_v7  ;;  %v1572_v17 = vpack.c.bf16 %v558_v15, %v557_v14  ;;  %v444_v19 = vld [vmem:[%s1905_s22 + $0x18] sm:$0xff]  ;;  %v1406_v21 = vld [vmem:[%s415_s14] ss:$0 sm:$0xff] }
  0x2d   : > { %1565 = vmatprep.subr.bf16.mxu0 %v1564_v10  ;;  %1584 = vmatprep.subr.bf16.mxu1 %v1568_v16  ;;  %v1972_v30 = vld [vmem:[%s418_s0] ss:$0 sm:$0xff] }
  0x2e   : > { %1586 = vmatpush3.bf16.msra.mxu1 %v1568_v16 }
  0x2f   : > { %1585 = vmatprep.subr.bf16.mxu1 %v1572_v17 }
  0x30   : > { %1567 = vmatpush3.bf16.msra.mxu0 %v1564_v10 }
  0x31   : > { %1569 = vmatprep.subr.bf16.mxu0 %v1568_v16 }
  0x32   : > { %1587 = vmatpush3.bf16.msra.mxu1 %v1572_v17 }
  0x33   : > { %1499 = vmatmul.mubr.msk.f32.vlgmr.msra.gmra.mrb[0].mxu0 %vm457_vm1, %v442_v18 }
  0x34   : > { %1501 = vmatprep.mubr.msk.f32.mxu0 %vm457_vm1, %v443_v11  ;;  %1571 = vmatpush3.bf16.msra.mxu0 %v1568_v16 }
  0x35   : > { %1573 = vmatprep.subr.bf16.mxu0 %v1572_v17  ;;  %1516 = vmatmul.mubr.msk.f32.vlgmr.msra.gmra.mrb[0].mxu1 %vm457_vm1, %v444_v19 }
  0x37   : > { %1502 = vmatmul.mubr.msk.f32.gmra.mrb[2].mxu0 %vm457_vm1, %v444_v19 }
  0x38   : > { %1575 = vmatpush3.bf16.msra.mxu0 %v1572_v17  ;;  %1512 = vmatprep.mubr.msk.f32.mxu0 %vm457_vm1, %v441_v9 }
  0x39   : > { %1518 = vmatprep.subr.mxu0 %v445_v20 }
  0x3b   : > { %1513 = vmatmul.mubr.msk.f32.vlgmr.msra.gmra.mrb[4].mxu0 %vm457_vm1, %v442_v18 }
  0x3c   : > { %1519 = vmatpush3.msra.mxu0 %v445_v20 }
 0x106   : > { %v1500_v22 = vpop.f32.mrb[0].mxu0 }
 0x107   : > { %v536_v23 = vpop.f32.mrb[1].mxu0  ;;  %v542_v25 = vadd.f32 %v1500_v22, %v1406_v21 }
 0x108   : > { %v537_v24 = vadd.f32 %v1406_v21, %v536_v23  ;;  %v1517_v36 = vpop.f32.mrb[0].mxu1 }
 0x10a   : > { %v1503_v26 = vpop.f32.mrb[2].mxu0  ;;  %1520 = vmatprep.mubr.msk.f32.mxu0 %vm651_vm2, %v537_v24 }
 0x10b   : > { %v552_v27 = vadd.f32 %v1503_v26, %v1406_v21  ;;  %v546_v28 = vpop.f32.mrb[3].mxu0  ;;  %1521 = vmatmul.mubr.msk.f32.vlgmr.msra.gmra.mrb[6].mxu0 %vm651_vm2, %v542_v25 }
 0x10c   : > { %v547_v29 = vadd.f32 %v1406_v21, %v546_v28  ;;  %v648_v28 = vadd.f32 %v1517_v36, %v1972_v30 }
 0x10e   : > { %1523 = vmatprep.mubr.msk.f32.mxu0 %vm651_vm2, %v547_v29  ;;  %v1514_v31 = vpop.f32.mrb[4].mxu0  ;;  %v642_v29 = vpop.f32.mrb[1].mxu1 }
 0x10f   : > { %1524 = vmatmul.mubr.msk.f32.gmra.mrb[8].mxu0 %vm651_vm2, %v552_v27  ;;  %v638_v32 = vadd.f32 %v1514_v31, %v1972_v30  ;;  %v632_v33 = vpop.f32.mrb[5].mxu0 }
 0x110   : > { %v633_v34 = vadd.f32 %v1972_v30, %v632_v33 }
 0x112   : > { %v1576_v35 = vpack.c.bf16 %v638_v32, %v633_v34  ;;  %v643_v32 = vadd.f32 %v1972_v30, %v642_v29 }
 0x114   : > { %1577 = vmatprep.subr.bf16.mxu1 %v1576_v35 }
 0x115   : > { %1579 = vmatpush3.bf16.msra.mxu1 %v1576_v35  ;;  %v1580_v35 = vpack.c.bf16 %v648_v28, %v643_v32 }
 0x117   : > { %1581 = vmatprep.subr.bf16.mxu0 %v1580_v35 }
 0x118   : > { %1583 = vmatpush3.bf16.msra.mxu0 %v1580_v35 }
 0x1de   : > { %v1522_v37 = vpop.f32.mrb[6].mxu0 }
 0x1df   : > { %v750_v38 = vsel %vm457_vm1, %v1522_v37, -inf  ;;  %v730_v39 = vpop.f32.mrb[7].mxu0 }
 0x1e0   : > { %v749_v40 = vsel %vm457_vm1, %v730_v39, -inf }
 0x1e1   : > { %v751_v41 = vmax.f32 %v749_v40, %v750_v38 }
 0x1e2   : > { %v1525_v42 = vpop.f32.mrb[8].mxu0 }
 0x1e3   : > { %v752_v43 = vrot.slane %v751_v41, 4  ;;  %v759_v44 = vsel %vm457_vm1, %v1525_v42, -inf  ;;  %v740_v45 = vpop.f32.mrb[9].mxu0 }
 0x1e4   : > { %v758_v46 = vsel %vm457_vm1, %v740_v45, -inf }
 0x1e5   : > { %v753_v47 = vmax.f32 %v751_v41, %v752_v43  ;;  %v760_v48 = vmax.f32 %v758_v46, %v759_v44 }
 0x1e7   : > { %v754_v49 = vrot.slane %v753_v47, 2  ;;  %v761_v50 = vrot.slane %v760_v48, 4 }
 0x1e9   : > { %v755_v51 = vmax.f32 %v753_v47, %v754_v49  ;;  %v762_v52 = vmax.f32 %v760_v48, %v761_v50 }
 0x1eb   : > { %v756_v53 = vrot.slane %v755_v51, 1  ;;  %v763_v54 = vrot.slane %v762_v52, 2 }
 0x1ed   : > { %v757_v55 = vmax.f32 %v755_v51, %v756_v53  ;;  %v764_v56 = vmax.f32 %v762_v52, %v763_v54  ;;  %v1063_v52 = vld [vmem:[#allocation2 + $0x8] sm:$0xff]  ;;  %v1062_v53 = vld [vmem:[#allocation2] sm:$0xff] }
 0x1ef   : > { %v767_v57 = vsub.f32 %v730_v39, %v757_v55  ;;  %v768_v58 = vsub.f32 %v1522_v37, %v757_v55  ;;  %v765_v59 = vrot.slane %v764_v56, 1  ;;  %v1070_v37 = vld [vmem:[%s1926_s16] sm:$0xff] }
 0x1f0   : > { %1546 = vmatprep.subr.mxu1 %v1070_v37 }
 0x1f1   : > { %v771_v60 = vmul.f32 1.442695, %v767_v57  ;;  %v773_v61 = vmul.f32 1.442695, %v768_v58  ;;  %v766_v62 = vmax.f32 %v764_v56, %v765_v59  ;;  %v1065_v58 = vld [vmem:[#allocation2 + $0x18] sm:$0xff]  ;;  %v1064_v59 = vld [vmem:[#allocation2 + $0x10] sm:$0xff] }
 0x1f3   : > { %1662 = vpow2.f32 %v771_v60  ;;  %v769_v63 = vsub.f32 %v740_v45, %v766_v62  ;;  %v770_v0 = vsub.f32 %v1525_v42, %v766_v62 }
 0x1f4   : > { %1664 = vpow2.f32 %v773_v61 }
 0x1f5   : > { %v775_v1 = vmul.f32 1.442695, %v769_v63  ;;  %v777_v2 = vmul.f32 1.442695, %v770_v0  ;;  %v1067_v0 = vld [vmem:[#allocation2 + $0x28] sm:$0xff] }
 0x1f7   : > { %1666 = vpow2.f32 %v775_v1  ;;  %v1066_v1 = vld [vmem:[#allocation2 + $0x20] sm:$0xff] }
 0x1f8   : > { %1668 = vpow2.f32 %v777_v2 }
 0x1fd   : > { %v1663_v3 = vpop.eup %1662 }
 0x1fe   : > { %v1665_v4 = vpop.eup %1664  ;;  %v779_v5 = vsel %vm457_vm1, %v1663_v3, 0.0 }
 0x1ff   : > { %v780_v6 = vsel %vm457_vm1, %v1665_v4, 0.0 }
 0x200   : > { %v781_v7 = vadd.f32 %v780_v6, %v779_v5  ;;  %v1069_v6 = vld [vmem:[#allocation2 + $0x38] sm:$0xff] }
 0x201   : > { %v1667_v8 = vpop.eup %1666 }
 0x202   : > { %v1669_v9 = vpop.eup %1668  ;;  %v782_v10 = vrot.slane %v781_v7, 4  ;;  %v788_v11 = vsel %vm457_vm1, %v1667_v8, 0.0 }
 0x203   : > { %v789_v12 = vsel %vm457_vm1, %v1669_v9, 0.0 }
 0x204   : > { %v790_v13 = vadd.f32 %v789_v12, %v788_v11  ;;  %v783_v14 = vadd.f32 %v782_v10, %v781_v7  ;;  %v1068_v7 = vld [vmem:[#allocation2 + $0x30] sm:$0xff] }
 0x206   : > { %v791_v15 = vrot.slane %v790_v13, 4  ;;  %v784_v16 = vrot.slane %v783_v14, 2 }
 0x208   : > { %v785_v17 = vadd.f32 %v784_v16, %v783_v14  ;;  %v792_v18 = vadd.f32 %v791_v15, %v790_v13 }
 0x20a   : > { %v786_v19 = vrot.slane %v785_v17, 1  ;;  %v793_v20 = vrot.slane %v792_v18, 2 }
 0x20c   : > { %v787_v21 = vadd.f32 %v786_v19, %v785_v17  ;;  %v794_v22 = vadd.f32 %v793_v20, %v792_v18 }
 0x20e   : > { %1670 = vrcp.f32 %v787_v21  ;;  %v795_v23 = vrot.slane %v794_v22, 1 }
 0x210   : > { %v796_v24 = vadd.f32 %v795_v23, %v794_v22 }
 0x212   : > { %1672 = vrcp.f32 %v796_v24 }
 0x218   : > { %v1671_v25 = vpop.eup %1670 }
 0x219   : > { %v798_v26 = vmul.f32 %v1671_v25, %v1663_v3  ;;  %v799_v27 = vmul.f32 %v1671_v25, %v1665_v4 }
 0x21b   : > { %803 = vxpose.xlu0.b32.start [1/2] (short) (narrow) %v798_v26, 32 }
 0x21c   : > { %v1673_v31 = vpop.eup %1672 }
 0x21d   : > { %v801_v33 = vmul.f32 %v1673_v31, %v1667_v8  ;;  %v802_v34 = vmul.f32 %v1673_v31, %v1669_v9 }
 0x21f   : > { %804 = vxpose.xlu0.b32.end [2/2] (short) (narrow) %v799_v27, 32  ;;  %933 = vxpose.xlu1.b32.start [1/2] (short) (narrow) %v801_v33, 32 }
 0x223   : > { %934 = vxpose.xlu1.b32.end [2/2] (short) (narrow) %v802_v34, 32 }
 0x29b   : > { %v819_v38 = vpop.trf.xlu0 }
 0x29c   : > { %1530 = vmatprep.mubr.msk.f32.mxu1 %vm835_vm3, %v819_v38 }
 0x29f   : > { %v820_v36 = vpop.trf.xlu0  ;;  %v949_v39 = vpop.trf.xlu1 }
 0x2a0   : > { %1531 = vmatmul.mubr.msk.f32.vlgmr.msra.gmra.mrb[2].mxu1 %vm835_vm3, %v820_v36  ;;  %1540 = vmatprep.mubr.msk.f32.mxu0 %vm835_vm3, %v949_v39 }
 0x2a1   : > { %1547 = vmatpush3.msra.mxu1 %v1070_v37 }
 0x2a3   : > { %v821_v30 = vpop.trf.xlu0  ;;  %v950_v40 = vpop.trf.xlu1 }
 0x2a4   : > { %1533 = vmatprep.mubr.msk.f32.mxu1 %vm835_vm3, %v821_v30  ;;  %1541 = vmatmul.mubr.msk.f32.vlgmr.msra.gmra.mrb[10].mxu0 %vm835_vm3, %v950_v40 }
 0x2a7   : > { %v822_v41 = vpop.trf.xlu0  ;;  %v951_v42 = vpop.trf.xlu1 }
 0x2a8   : > { %1534 = vmatmul.mubr.msk.f32.gmra.mrb[4].mxu1 %vm835_vm3, %v822_v41  ;;  %1543 = vmatprep.mubr.msk.f32.mxu0 %vm835_vm3, %v951_v42 }
 0x2ab   : > { %v952_v43 = vpop.trf.xlu1 }
 0x2ac   : > { %1544 = vmatmul.mubr.msk.f32.gmra.mrb[12].mxu0 %vm835_vm3, %v952_v43 }
 0x373   : > { %v1532_v44 = vpop.f32.mrb[2].mxu1 }
 0x374   : > { %v914_v45 = vpop.f32.mrb[3].mxu1 }
 0x375   : > { %1548 = vmatprep.mubr.msk.f32.mxu1 %vm651_vm2, %v914_v45 }
 0x376   : > { %1549 = vmatmul.mubr.msk.f32.vlgmr.msra.gmra.mrb[6].mxu1 %vm651_vm2, %v1532_v44 }
 0x377   : > { %v1542_v46 = vpop.f32.mrb[10].mxu0 }
 0x378   : > { %v1043_v47 = vpop.f32.mrb[11].mxu0 }
 0x37b   : > { %v1535_v48 = vpop.f32.mrb[4].mxu1 }
 0x37c   : > { %v924_v49 = vpop.f32.mrb[5].mxu1 }
 0x37d   : > { %1551 = vmatprep.mubr.msk.f32.mxu1 %vm651_vm2, %v924_v49 }
 0x37e   : > { %1552 = vmatmul.mubr.msk.f32.gmra.mrb[8].mxu1 %vm651_vm2, %v1535_v48 }
 0x37f   : > { %1554 = vmatprep.mubr.msk.f32.mxu1 %vm651_vm2, %v1043_v47  ;;  %v1545_v50 = vpop.f32.mrb[12].mxu0 }
 0x380   : > { %v1053_v51 = vpop.f32.mrb[13].mxu0 }
 0x382   : > { %1555 = vmatmul.mubr.msk.f32.gmra.mrb[10].mxu1 %vm651_vm2, %v1542_v46 }
 0x383   : > { %1557 = vmatprep.mubr.msk.f32.mxu1 %vm651_vm2, %v1053_v51 }
 0x386   : > { %1558 = vmatmul.mubr.msk.f32.gmra.mrb[12].mxu1 %vm651_vm2, %v1545_v50 }
 0x449   : > { %v1550_v54 = vpop.f32.mrb[6].mxu1 }
 0x44a   : > { %v1201_v55 = vadd.f32 %v1550_v54, %v1063_v52  ;;  %v1161_v56 = vpop.f32.mrb[7].mxu1 }
 0x44b   : > { %v1200_v57 = vadd.f32 %v1161_v56, %v1062_v53 }
 0x44c   : > { %1209 = vst.msk [vmem:[#allocation2 + $0x8] sm:$0xff] %vm457_vm1, %v1201_v55 }
 0x44d   : > { %1208 = vst.msk [vmem:[#allocation2] sm:$0xff] %vm457_vm1, %v1200_v57 }
 0x451   : > { %v1553_v60 = vpop.f32.mrb[8].mxu1 }
 0x452   : > { %v1203_v61 = vadd.f32 %v1553_v60, %v1065_v58  ;;  %v1171_v62 = vpop.f32.mrb[9].mxu1 }
 0x453   : > { %v1202_v63 = vadd.f32 %v1171_v62, %v1064_v59  ;;  %v1221_v13 = vld [vmem:[#allocation2 + $0x8] sm:$0xff] (!%p1436_p1) }
 0x454   : > { %1211 = vst.msk [vmem:[#allocation2 + $0x18] sm:$0xff] %vm457_vm1, %v1203_v61  ;;  %v1220_v12 = vld [vmem:[#allocation2] sm:$0xff] (!%p1436_p1)  ;;  %1229 = vst.msk [vmem:[%s1928_s10 + $0x8] sm:$0xff] (!%p1436_p1), %vm457_vm1, %v1221_v13 }
 0x455   : > { %1210 = vst.msk [vmem:[#allocation2 + $0x10] sm:$0xff] %vm457_vm1, %v1202_v63  ;;  %v1556_v2 = vpop.f32.mrb[10].mxu1  ;;  %1228 = vst.msk [vmem:[%s1928_s10] sm:$0xff] (!%p1436_p1), %vm457_vm1, %v1220_v12 }
 0x456   : > { %v1205_v3 = vadd.f32 %v1556_v2, %v1067_v0  ;;  %v1181_v4 = vpop.f32.mrb[11].mxu1 }
 0x457   : > { %v1204_v5 = vadd.f32 %v1181_v4, %v1066_v1  ;;  %1219 = sbr.rel (%p1436_p1) target bundleno = 1126 (0x466), region = 60 }
 0x458   : > { %1213 = vst.msk [vmem:[#allocation2 + $0x28] sm:$0xff] %vm457_vm1, %v1205_v3 }
 0x459   : > { %1212 = vst.msk [vmem:[#allocation2 + $0x20] sm:$0xff] %vm457_vm1, %v1204_v5  ;;  %v1559_v8 = vpop.f32.mrb[12].mxu1 }
 0x45a   : > { %v1207_v9 = vadd.f32 %v1559_v8, %v1069_v6  ;;  %v1191_v10 = vpop.f32.mrb[13].mxu1 }
 0x45b   : > { %v1206_v11 = vadd.f32 %v1191_v10, %v1068_v7  ;;  %v1223_v15 = vld [vmem:[#allocation2 + $0x18] sm:$0xff] (!%p1436_p1) }
 0x45c   : > { %1215 = vst.msk [vmem:[#allocation2 + $0x38] sm:$0xff] %vm457_vm1, %v1207_v9  ;;  %v1222_v14 = vld [vmem:[#allocation2 + $0x10] sm:$0xff] (!%p1436_p1)  ;;  %1231 = vst.msk [vmem:[%s1928_s10 + $0x18] sm:$0xff] (!%p1436_p1), %vm457_vm1, %v1223_v15 }
 0x45d   : > { %1214 = vst.msk [vmem:[#allocation2 + $0x30] sm:$0xff] %vm457_vm1, %v1206_v11  ;;  %1230 = vst.msk [vmem:[%s1928_s10 + $0x10] sm:$0xff] (!%p1436_p1), %vm457_vm1, %v1222_v14 }
 0x45f   : > { %v1225_v17 = vld [vmem:[#allocation2 + $0x28] sm:$0xff] }
 0x460   : > { %v1224_v16 = vld [vmem:[#allocation2 + $0x20] sm:$0xff]  ;;  %1233 = vst.msk [vmem:[%s1928_s10 + $0x28] sm:$0xff] %vm457_vm1, %v1225_v17 }
 0x461   : > { %1232 = vst.msk [vmem:[%s1928_s10 + $0x20] sm:$0xff] %vm457_vm1, %v1224_v16 }
 0x463   : > { %v1227_v19 = vld [vmem:[#allocation2 + $0x38] sm:$0xff] }
 0x464   : > { %v1226_v18 = vld [vmem:[#allocation2 + $0x30] sm:$0xff]  ;;  %1235 = vst.msk [vmem:[%s1928_s10 + $0x38] sm:$0xff] %vm457_vm1, %v1227_v19 }
 0x465   : > { %1234 = vst.msk [vmem:[%s1928_s10 + $0x30] sm:$0xff] %vm457_vm1, %v1226_v18 }
 0x466 PF: > { %s1447_s30 = sshll.u32 %s1756_s9, 10  ;;  %s2130_s19 = sld [smem:[#allocation17_spill]] }
 0x467   : > { %s1251_s11 = sshll.u32 %s1928_s10, 4  ;;  %s2131_s15 = sand.u32 1, %s1744_s28   ;;  %s2037_s11 = int_to_ptr.vmem [resolvable:$true] %s1251_s11 }
 0x468   : > { %s2041_s16 = scalar_lea.sflag [#allocation4], %s2131_s15  ;;  %s1674_s27 = scalar_lea.vmem %s2037_s11, 1024 }
 0x469   : > { %p1675_p2 = scmp.ne.s32.totalorder %s2037_s11, %s1674_s27  ;;  %s1770_s9 = smov [#allocation3]  }
 0x46a   : > { %s1678_s18 = sshll.u32 %s1770_s9, 4  ;;  %s1679_s18 = int_to_ptr.vmem [resolvable:$false] %s1678_s18 }
 0x46b   : > { %p1676_p4 = pnand %p1675_p2, %p1867_p3  ;;  %s1680_s8 = scalar_lea.vmem %s1679_s18, 2048 }
 0x46c   : > { %s2034_s24 = scalar_lea.hbm %s2130_s19, %s1447_s30  ;;  %p1681_p6 = scmp.lt.s32.totalorder %s2037_s11, %s1679_s18 }
 0x46d   : > { %p1677_p5 = pneg %p1676_p4  ;;  %p1682_p7 = scmp.lt.s32.totalorder %s1680_s8, %s1674_s27 }
 0x46f   : > { %p1683_p8 = por %p1682_p7, %p1681_p6 }
 0x471   : > { %p1684_p10 = pnand %p1683_p8, %p1677_p5 }
 0x473   : > { %1687 = shalt.err (!%p1684_p10)
}
 0x474   : > { %s1688_s10 = scalar_lea.hbm %s2034_s24, 1024  ;;  %s1692_s13 = scalar_lea.hbm %s2130_s19, 2048 }
 0x475   : > { %p1689_p11 = scmp.ne.s32.totalorder %s2034_s24, %s1688_s10  ;;  %p1693_p0 = scmp.lt.u32.totalorder %s2034_s24, %s2130_s19 }
 0x476   : > { %p1694_p1 = scmp.lt.u32.totalorder %s1692_s13, %s1688_s10  ;;  %p1696_p4 = scmp.lt.u32.totalorder %s1688_s10, %s2034_s24 }
 0x477   : > { %p1690_p12 = pnand %p1689_p11, %p1867_p3 }
 0x478   : > { %p1695_p2 = por %p1694_p1, %p1693_p0 }
 0x479   : > { %p1691_p13 = pneg %p1690_p12 }
 0x47a   : > { %p1697_p5 = por %p1696_p4, %p1695_p2 }
 0x47c   : > { %p1698_p6 = pnand %p1697_p5, %p1691_p13 }
 0x47e   : > { %1701 = shalt.err (!%p1698_p6)
}
 0x47f   : > { %s1771_s29 = smov 128   ;;  %s1772_s12 = smov 8  }
 0x480   : > { %1588 = dma.vmem_to_hbm [thread:$0]  (%p1867_p3), %s2037_s11, 1024, %s2034_s24, %s2041_s16, %s1771_s29, %s1771_s29, %s1772_s12  }
 0x481 PF: > { %s2132_s22 = sld [smem:[#allocation10_spill]]  ;;  %s2133_s20 = sld [smem:[#allocation6_spill]] }
 0x487   : > { %p1594_p7 = scmp.ge.s32.totalorder %s2132_s22, 2  ;;  %s1266_s25 = sand.u32 1, %s2133_s20  }
 0x488   : > { %s1267_s14 = scalar_lea.sflag [#allocation4], %s1266_s25 }
 0x489   : > { %p1591_p8 = pnand %p1594_p7, %p1877_p9 }
 0x48b   : > { %1735 = dma.done.wait (!%p1591_p8), %s1267_s14, 1024  }
 0x48c   : > { %1737 = vsyncadd (!%p1591_p8), %s1267_s14, 4294966272  ;;  %s21_s12 = sadd.s32 1, %s2132_s22   ;;  %s2135_s15 = sld [smem:[#allocation7_spill]] }
 0x48d   : > { %p18_p10 = scmp.ge.s32.totalorder %s21_s12, 10   ;;  %s2136_s29 = sld [smem:[#allocation15_spill]] }
 0x48e   : > { %s2137_s30 = sld [smem:[#allocation8_spill]]  ;;  %s2138_s9 = sld [smem:[#allocation9_spill]] }
 0x48f   : > { %s2139_s10 = sld [smem:[#allocation11_spill]]  ;;  %s2140_s11 = sld [smem:[#allocation13_spill]] }
 0x490   : > { %s2141_s27 = smov %s1744_s28  ;;  %20 = sbr.rel (!%p18_p10) target bundleno = 8 (0x8), region = 113 }
 0x492   : > { %s2142_s28 = smov %s2135_s15 }
 0x497   :  { %1272 = vsyncpa [#allocation4], 1 }
 0x498   :  { %1274 = vsyncpa [#allocation4 + $0x1], 1 }

</bundles_post_ra>
